<compile_context>
chip_gen: v6e
topology: v6e:2x2x1
jax: 0.10.0
libtpu: 0.0.40
codegen_flags: <defaults>
</compile_context>

<pallas_src>
import functools

import jax
import jax.numpy as jnp
from jax.experimental import pallas as pl
from jax.experimental.pallas import tpu as pltpu


# ---------------------------------------------------------------------------
# Pallas kernel: one lane-dense streaming matmul  M (B*2, K) @ T_tile (K, tile)
# ---------------------------------------------------------------------------

def _tps_forward_kernel(m_ref, t_ref, o_ref):
    # m_ref: (B*2, K)        tiny mapping matrix, coords on sublanes
    # t_ref: (K, tile_hw)    target_coordinate_repr^T tile (lane-dense stream)
    # o_ref: (B*2, tile_hw)
    o_ref[...] = jnp.dot(m_ref[...], t_ref[...],
                         preferred_element_type=jnp.float32)


def _round_up(x, m):
    return ((x + m - 1) // m) * m


def _chip_tile_params():
    """(max tile columns, # TensorCores to split the grid across)."""
    cap, cores = 32768, 1          # safe default (fits 16 MiB scoped VMEM)
    try:
        kind = jax.devices()[0].device_kind.lower()
    except Exception:
        return cap, cores
    if "v7" in kind:
        cap, cores = 65536, 2      # 32 MiB scoped VMEM default, 2 TCs/chip
    elif "v6" in kind:
        cap, cores = 65536, 1      # 32 MiB scoped VMEM default
    elif "v5p" in kind:
        cap, cores = 32768, 2      # megacore
    elif "v4" in kind:
        cap, cores = 32768, 2      # megacore
    # v5e / unknown: keep the conservative default.
    return cap, cores


def _choose_hw_tiling(hw):
    """Pick (HW_pad, tile_hw): lane-dense, huge tiles, bounded VMEM, low waste."""
    hw128 = _round_up(max(hw, 128), 128)
    cap, cores = _chip_tile_params()
    n = max(1, -(-hw128 // cap))               # ceil-div: tiles needed under cap
    if cores > 1 and hw128 >= 2 * 128:
        if n == 1:
            n = 2                              # give each TensorCore work
        elif n % 2 == 1:
            n += 1                             # even split across 2 TCs
    tile = _round_up(-(-hw128 // n), 128)      # per-tile columns, 128-aligned
    return tile * n, tile


@functools.partial(jax.jit, static_argnames=("hw", "tile_hw"))
def tps_forward(a_pad, t_t_pad, source_control_points, *, hw, tile_hw):
    """a_pad: (N, Kpad) = padded inverse_kernel[:, :N].T,
       t_t_pad: (Kpad, HW_pad) = padded target_coordinate_repr.T,
       source_control_points: (B, N, 2)."""
    B, N, _ = source_control_points.shape
    Kpad = a_pad.shape[1]
    HW_pad = t_t_pad.shape[1]
    B2 = B * 2

    # (B, N, 2) -> (B*2, N): x/y coordinate rows, control points on lanes.
    y2 = jnp.transpose(source_control_points.astype(jnp.float32),
                       (0, 2, 1)).reshape(B2, N)

    # Tiny prologue matmul (a few hundred bytes) hoisted out of the tile loop.
    m = jnp.dot(y2, a_pad, preferred_element_type=jnp.float32)   # (B*2, Kpad)

    out = pl.pallas_call(
        _tps_forward_kernel,
        out_shape=jax.ShapeDtypeStruct((B2, HW_pad), jnp.float32),
        grid=(HW_pad // tile_hw,),
        in_specs=[
            pl.BlockSpec((B2, Kpad), lambda i: (0, 0)),
            pl.BlockSpec((Kpad, tile_hw), lambda i: (0, i)),
        ],
        out_specs=pl.BlockSpec((B2, tile_hw), lambda i: (0, i)),
        compiler_params=pltpu.CompilerParams(
            dimension_semantics=("parallel",)),
    )(m, t_t_pad)

    # (B*2, HW_pad) -> (B, HW, 2), matching the PyTorch output layout.
    src = out[:, :hw].reshape(B, 2, hw)
    return jnp.transpose(src, (0, 2, 1))


# ---------------------------------------------------------------------------
# Init-time buffer construction (mirrors TPSGridGen.__init__ / register_buffer)
# ---------------------------------------------------------------------------

def compute_partial_repr(input_points, control_points):
    """U(r) = 0.5 * r^2 * log(r^2), with 0 where r == 0 (NaN-free form)."""
    diff = input_points[:, None, :] - control_points[None, :, :]
    dist = jnp.sum(diff * diff, axis=-1)
    safe = jnp.where(dist == 0.0, 1.0, dist)
    return jnp.where(dist == 0.0, 0.0, 0.5 * dist * jnp.log(safe))


class TPSGridGen:
    def __init__(self, target_height, target_width, target_control_points):
        tcp = jnp.asarray(target_control_points, jnp.float32)
        assert tcp.ndim == 2 and tcp.shape[1] == 2
        assert target_height > 1 and target_width > 1
        N = tcp.shape[0]
        self.num_points = N

        # forward_kernel (N+3, N+3) and its inverse.
        part = compute_partial_repr(tcp, tcp)
        fk = jnp.zeros((N + 3, N + 3), jnp.float32)
        fk = fk.at[:N, :N].set(part)
        fk = fk.at[:N, N].set(1.0)
        fk = fk.at[N, :N].set(1.0)
        fk = fk.at[:N, N + 1:].set(tcp)
        fk = fk.at[N + 1:, :N].set(tcp.T)
        # TODO(synk): matrix inverse has no clean Pallas equivalent; it is an
        # init-time buffer (register_buffer), computed once with jnp.linalg.inv.
        inverse_kernel = jnp.linalg.inv(fk)

        # target_coordinate_repr (HW, N+3), matching itertools.product(H, W) order.
        HW = target_height * target_width
        ys = jnp.arange(target_height, dtype=jnp.float32)
        xs = jnp.arange(target_width, dtype=jnp.float32)
        gy, gx = jnp.meshgrid(ys, xs, indexing="ij")
        Y = gy.reshape(-1) * 2.0 / (target_height - 1) - 1.0
        X = gx.reshape(-1) * 2.0 / (target_width - 1) - 1.0
        target_coordinate = jnp.stack([X, Y], axis=1)                     # (HW, 2)
        tcr_part = compute_partial_repr(target_coordinate, tcp)           # (HW, N)
        target_coordinate_repr = jnp.concatenate(
            [tcr_part, jnp.ones((HW, 1), jnp.float32), target_coordinate], axis=1)

        # Plain buffers (for reference / parity with the PyTorch module).
        self.inverse_kernel = inverse_kernel                              # (N+3, N+3)
        self.target_coordinate_repr = target_coordinate_repr              # (HW, N+3)
        self.padding_matrix = jnp.zeros((3, 2), jnp.float32)

        # Kernel-layout buffers: fold zero-pad rows, 8-align the N+3 dim,
        # pre-transpose T, pad HW to the chosen tiling.
        self._hw = HW
        hw_pad, tile_hw = _choose_hw_tiling(HW)
        self._tile_hw = tile_hw
        Kpad = _round_up(N + 3, 8)
        a = inverse_kernel[:, :N].T                                       # (N, N+3)
        self._a_pad = jnp.pad(a, ((0, 0), (0, Kpad - (N + 3))))           # (N, Kpad)
        t_t = target_coordinate_repr.T                                    # (N+3, HW)
        self._t_t_pad = jnp.pad(
            t_t, ((0, Kpad - (N + 3)), (0, hw_pad - HW)))                 # (Kpad, HW_pad)

    def __call__(self, source_control_points):
        assert source_control_points.ndim == 3
        assert source_control_points.shape[1] == self.num_points
        assert source_control_points.shape[2] == 2
        return tps_forward(self._a_pad, self._t_t_pad, source_control_points,
                           hw=self._hw, tile_hw=self._tile_hw)


# ---------------------------------------------------------------------------
# Main
# ---------------------------------------------------------------------------

if __name__ == "__main__":
    key = jax.random.PRNGKey(0)

    # 4x4 control points on a regular grid in [-0.9, 0.9]; 32x32 target grid.
    grid_h, grid_w = 4, 4
    target_h, target_w = 32, 32
    ys = jnp.linspace(-0.9, 0.9, grid_h)
    xs = jnp.linspace(-0.9, 0.9, grid_w)
    gy, gx = jnp.meshgrid(ys, xs, indexing="ij")
    target_control_points = jnp.stack([gx.reshape(-1), gy.reshape(-1)], axis=1)

    tps = TPSGridGen(target_h, target_w, target_control_points)

    B = 2
    noise = 0.05 * jax.random.normal(key, (B, tps.num_points, 2), jnp.float32)
    source_control_points = target_control_points[None, :, :] + noise

    out = tps(source_control_points)
    jax.block_until_ready(out)

    # Pure-JAX reference of the original (un-folded) forward for a sanity check.
    Y = jnp.concatenate(
        [source_control_points, jnp.zeros((B, 3, 2), jnp.float32)], axis=1)
    mapping = jnp.einsum("ij,bjk->bik", tps.inverse_kernel, Y)
    ref = jnp.einsum("ij,bjk->bik", tps.target_coordinate_repr, mapping)

    assert out.shape == (B, target_h * target_w, 2)
    assert bool(jnp.all(jnp.isfinite(out)))
    assert bool(jnp.allclose(out, ref, atol=1e-4, rtol=1e-4))
    print("KERNEL_OK")
</pallas_src>

<mosaic_0001>
module attributes {stable_mosaic.version = 11 : i64} {
  func.func @_tps_forward_kernel(%arg0: i32, %arg1: memref<4x24xf32, #tpu.memory_space<vmem>>, %arg2: memref<24x1024xf32, #tpu.memory_space<vmem>>, %arg3: memref<4x1024xf32, #tpu.memory_space<vmem>>) attributes {dimension_semantics = [#tpu.dimension_semantics<parallel>], iteration_bounds = array<i64: 1>, scalar_prefetch = 0 : i64, scratch_operands = 0 : i64, tpu.core_type = #tpu.core_type<tc>, window_params = [{pipeline_mode = #tpu.pipeline_mode<synchronous>, transform_indices = @transform_0, window_bounds = array<i64: 4, 24>}, {transform_indices = @transform_1, window_bounds = array<i64: 24, 1024>}, {transform_indices = @transform_2, window_bounds = array<i64: 4, 1024>}]} {
    %c0 = arith.constant 0 : index
    %c0_0 = arith.constant 0 : index
    %0 = vector.load %arg1[%c0, %c0_0] : memref<4x24xf32, #tpu.memory_space<vmem>>, vector<4x24xf32>
    %c0_1 = arith.constant 0 : index
    %c0_2 = arith.constant 0 : index
    %1 = vector.load %arg2[%c0_1, %c0_2] : memref<24x1024xf32, #tpu.memory_space<vmem>>, vector<24x1024xf32>
    %cst = arith.constant dense<0.000000e+00> : vector<4x1024xf32>
    %2 = tpu.matmul %0, %1, %cst {dimension_numbers = #tpu.dot_dimension_numbers<[1], [0], [0], [1], [0, 0, 1, 1], [], []>} : vector<4x24xf32>, vector<24x1024xf32>, vector<4x1024xf32> -> vector<4x1024xf32>
    %c0_3 = arith.constant 0 : index
    %c0_4 = arith.constant 0 : index
    %3 = vector.load %arg3[%c0_3, %c0_4] : memref<4x1024xf32, #tpu.memory_space<vmem>>, vector<4x1024xf32>
    tpu.vector_store %arg3[%c0_3, %c0_4], %2 {strides = array<i32>} : memref<4x1024xf32, #tpu.memory_space<vmem>>, vector<4x1024xf32>,
    return
  }
  func.func @transform_0(%arg0: i32) -> (i32, i32) {
    %c0_i32 = arith.constant 0 : i32
    %c0_i32_0 = arith.constant 0 : i32
    %c0_i32_1 = arith.constant 0 : i32
    return %c0_i32, %c0_i32_0 : i32, i32
  }
  func.func @transform_1(%arg0: i32) -> (i32, i32) {
    %c0_i32 = arith.constant 0 : i32
    %c0_i32_0 = arith.constant 0 : i32
    return %c0_i32, %arg0 : i32, i32
  }
  func.func @transform_2(%arg0: i32) -> (i32, i32) {
    %c0_i32 = arith.constant 0 : i32
    %c0_i32_0 = arith.constant 0 : i32
    return %c0_i32, %arg0 : i32, i32
  }
}

</mosaic_0001>

<bundles_post_ra>
// kernel: tps_forward.1
= control target key start
LH: loop header
LB: loop body
LE: loop exit
PB: predicated region body
PF: predicated region fallthrough
CT: control target
= control target key end

     0   :  { %7 = vsyncpa [#allocation3], 0  ;;  %s393_s9 = smov [#allocation2]   ;;  %s434_s0 = inlined_call_operand.vmem [shape: f32[4,24], index: 0, kind: input, shape index: {}]   ;;  %s435_s1 = inlined_call_operand.hbm [shape: f32[24,1024], index: 1, kind: input, shape index: {}]   ;;  %s436_s2 = inlined_call_operand.vmem [shape: f32[4,1024], index: 2, kind: output, shape index: {}]  }
   0x1   :  { %s15_s10 = sshll.u32 %s393_s9, 4  ;;  %s16_s10 = int_to_ptr.vmem [resolvable:$true] %s15_s10 }
   0x2   :  { %s379_s11 = scalar_lea.vmem %s16_s10, 3072  ;;  %p384_p1 = scmp.lt.s32.totalorder %s16_s10, %s16_s10 }
   0x3   :  { %p380_p0 = scmp.ne.s32.totalorder %s16_s10, %s379_s11  ;;  %p385_p2 = scmp.lt.s32.totalorder %s379_s11, %s379_s11 }
   0x5   :  { %p386_p3 = por %p385_p2, %p384_p1 }
   0x7   :  { %p387_p4 = pnand %p386_p3, %p380_p0 }
   0x9   :  { %390 = shalt.err (!%p387_p4)
}
   0xa   :  { %s394_s12 = smov 1024   ;;  %s395_s13 = smov 64  }
   0xb   :  { %21 = dma.hbm_to_vmem [thread:$0]  %s435_s1, 3072, %s16_s10, [#allocation3], %s394_s12, %s394_s12, %s395_s13  }
   0xc   :  { %391 = dma.done.wait [#allocation3], 3072  }
   0xd   :  { %392 = vsyncadd [#allocation3], 4294964224  ;;  %v396_v0 = vmov 0.0   ;;  %v43_v1 = vld [vmem:[#allocation2 + $0x88] sm:$0xff]  ;;  %v45_v2 = vld [vmem:[#allocation2 + $0x98] sm:$0xff]  ;;  %vm50_vm0 = vcmask 195584  }
   0xe   :  { %118 = vmatprep.mubr.f32.mxu0 %v396_v0  ;;  %189 = vmatprep.mubr.f32.mxu1 %v396_v0  ;;  %v42_v3 = vld [vmem:[#allocation2 + $0x80] sm:$0xff]  ;;  %v44_v4 = vld [vmem:[#allocation2 + $0x90] sm:$0xff]  ;;  %v35_v5 = vld [vmem:[#allocation2 + $0x48] sm:$0xff] }
   0xf   :  { %80 = vmatprep.subr.mxu0 %v43_v1  ;;  %151 = vmatprep.subr.mxu1 %v45_v2  ;;  %v37_v6 = vld [vmem:[#allocation2 + $0x58] sm:$0xff]  ;;  %v34_v7 = vld [vmem:[#allocation2 + $0x40] sm:$0xff]  ;;  %v36_v8 = vld [vmem:[#allocation2 + $0x50] sm:$0xff] }
  0x10   :  { %81 = vmatpush1.msra.mxu0 %v42_v3  ;;  %152 = vmatpush1.msra.mxu1 %v44_v4  ;;  %v27_v9 = vld [vmem:[#allocation2 + $0x8] sm:$0xff]  ;;  %v29_v10 = vld [vmem:[#allocation2 + $0x18] sm:$0xff]  ;;  %v26_v11 = vld [vmem:[#allocation2] sm:$0xff] }
  0x11   :  { %82 = vmatprep.subr.mxu0 %v35_v5  ;;  %153 = vmatprep.subr.mxu1 %v37_v6  ;;  %v28_v12 = vld [vmem:[#allocation2 + $0x10] sm:$0xff]  ;;  %v25_v13 = vld [vmem:[%s434_s0] sm:$0xf]  ;;  %v47_v14 = vld [vmem:[#allocation2 + $0xa8] sm:$0xff] }
  0x12   :  { %83 = vmatpush1.msra.mxu0 %v34_v7  ;;  %154 = vmatpush1.msra.mxu1 %v36_v8  ;;  %v49_v15 = vld [vmem:[#allocation2 + $0xb8] sm:$0xff]  ;;  %v46_v16 = vld [vmem:[#allocation2 + $0xa0] sm:$0xff]  ;;  %v48_v17 = vld [vmem:[#allocation2 + $0xb0] sm:$0xff] }
  0x13   :  { %84 = vmatprep.subr.mxu0 %v27_v9  ;;  %155 = vmatprep.subr.mxu1 %v29_v10  ;;  %v39_v18 = vld [vmem:[#allocation2 + $0x68] sm:$0xff]  ;;  %v41_v19 = vld [vmem:[#allocation2 + $0x78] sm:$0xff]  ;;  %v38_v20 = vld [vmem:[#allocation2 + $0x60] sm:$0xff] }
  0x14   :  { %85 = vmatpush1.msra.mxu0 %v26_v11  ;;  %156 = vmatpush1.msra.mxu1 %v28_v12  ;;  %v40_v21 = vld [vmem:[#allocation2 + $0x70] sm:$0xff]  ;;  %v31_v22 = vld [vmem:[#allocation2 + $0x28] sm:$0xff]  ;;  %v33_v23 = vld [vmem:[#allocation2 + $0x38] sm:$0xff] }
  0x15   :  { %363 = vmatmul.mubr.msk.f32.vlgmr.msra.gmra.mxu0 %vm50_vm0, %v25_v13  ;;  %364 = vmatmul.mubr.msk.f32.vlgmr.msra.gmra.mxu1 %vm50_vm0, %v25_v13  ;;  %v30_v24 = vld [vmem:[#allocation2 + $0x20] sm:$0xff]  ;;  %v32_v25 = vld [vmem:[#allocation2 + $0x30] sm:$0xff] }
  0x16   :  { %222 = vmatprep.subr.mxu0 %v47_v14  ;;  %293 = vmatprep.subr.mxu1 %v49_v15 }
  0x17   :  { %223 = vmatpush1.msra.mxu0 %v46_v16  ;;  %294 = vmatpush1.msra.mxu1 %v48_v17 }
  0x18   :  { %224 = vmatprep.subr.mxu0 %v39_v18  ;;  %295 = vmatprep.subr.mxu1 %v41_v19 }
  0x19   :  { %225 = vmatpush1.msra.mxu0 %v38_v20  ;;  %296 = vmatpush1.msra.mxu1 %v40_v21 }
  0x1a   :  { %226 = vmatprep.subr.mxu0 %v31_v22  ;;  %297 = vmatprep.subr.mxu1 %v33_v23 }
  0x1b   :  { %227 = vmatpush1.msra.mxu0 %v30_v24  ;;  %260 = vmatprep.mubr.f32.mxu0 %v396_v0 }
  0x1c   :  { %298 = vmatpush1.msra.mxu1 %v32_v25  ;;  %331 = vmatprep.mubr.f32.mxu1 %v396_v0 }
  0x1d   :  { %365 = vmatmul.mubr.msk.f32.vlgmr.msra.gmra.mxu0 %vm50_vm0, %v25_v13  ;;  %366 = vmatmul.mubr.msk.f32.vlgmr.msra.gmra.mxu1 %vm50_vm0, %v25_v13 }
  0xd5   :  { %v120_v26 = vpop.f32.mrf.mxu0  ;;  %v191_v27 = vpop.f32.mrf.mxu1 }
  0xd7   :  { %v122_v28 = vpop.f32.mrf.mxu0  ;;  %v193_v29 = vpop.f32.mrf.mxu1 }
  0xd8   :  { %v346_v30 = vcombine.low %v120_v26, %v122_v28  ;;  %v347_v31 = vcombine.low %v191_v27, %v193_v29 }
  0xda   :  { %354 = vst [vmem:[%s436_s2] sm:$0xff] %v346_v30  ;;  %355 = vst [vmem:[%s436_s2 + $0x8] sm:$0xff] %v347_v31 }
  0xdd   :  { %v262_v32 = vpop.f32.mrf.mxu0  ;;  %v333_v33 = vpop.f32.mrf.mxu1 }
  0xdf   :  { %v264_v34 = vpop.f32.mrf.mxu0  ;;  %v335_v35 = vpop.f32.mrf.mxu1 }
  0xe0   :  { %v348_v36 = vcombine.low %v262_v32, %v264_v34  ;;  %v349_v37 = vcombine.low %v333_v33, %v335_v35 }
  0xe2   :  { %356 = vst [vmem:[%s436_s2 + $0x10] sm:$0xff] %v348_v36  ;;  %357 = vst [vmem:[%s436_s2 + $0x18] sm:$0xff] %v349_v37 }
  0xe3   :  { %362 = vsyncpa [#allocation3], 1 }

</bundles_post_ra>
